<compile_context>
chip_gen: v7x
topology: tpu7x:2x2x1
jax: 0.10.0
libtpu: 0.0.40
codegen_flags: <defaults>
</compile_context>

<pallas_src>
from functools import partial

import jax
import jax.numpy as jnp
from jax.experimental import pallas as pl
from jax.experimental.pallas import tpu as pltpu


def _round_up(n, m):
    return ((n + m - 1) // m) * m


def _highway_kernel(x_ref, w_ref, b_ref, o_ref, act_ref, *, resident):
    """Fused highway stack.

    Grid: (num_batch_tiles, num_layers); layer axis is the inner 'arbitrary' axis.
      x_ref:   (TILE_B, Dp)        input activations (same block across layer axis)
      w_ref:   (L, Dp, 2Dp) if resident else (1, Dp, 2Dp)   fused [W_h | W_g]
      b_ref:   (L, 1, 2Dp)  if resident else (1, 1, 2Dp)    fused [b_h | b_g] (f32)
      o_ref:   (TILE_B, Dp)        output block (materialized after last layer)
      act_ref: (TILE_B, Dp) f32    VMEM-resident activation carried across layers
    """
    l = pl.program_id(1)
    d = act_ref.shape[-1]  # padded feature dim Dp

    @pl.when(l == 0)
    def _():
        act_ref[...] = x_ref[...].astype(jnp.float32)

    cur = act_ref[...]  # f32 (TILE_B, Dp)

    idx = l if resident else 0
    wl = w_ref[idx]     # (Dp, 2Dp), native weight dtype (f32 or bf16)
    bl = b_ref[idx]     # (1, 2Dp), f32

    # Single fused MXU matmul, f32 accumulation; bias added on the accumulator.
    proj = jnp.dot(cur.astype(w_ref.dtype), wl,
                   preferred_element_type=jnp.float32) + bl

    # proj[:, :d] -> nonlinear branch, proj[:, d:] -> gate branch.  With d a
    # multiple of 128 this split is on a vreg tile boundary (no lane masking).
    nonlinear = jnp.maximum(proj[:, :d], 0.0)                  # relu(A(x))
    gate = 0.5 * (jnp.tanh(0.5 * proj[:, d:]) + 1.0)           # sigmoid(B(x)), 1 EUP op
    new_act = nonlinear + gate * (cur - nonlinear)             # g*x + (1-g)*f(A(x))

    act_ref[...] = new_act

    @pl.when(l == pl.num_programs(1) - 1)
    def _():
        o_ref[...] = new_act.astype(o_ref.dtype)


def highway_forward(x, w_cat, b_cat, *, tile_b_max=512,
                    resident_budget_bytes=16 << 20,
                    act_vmem_budget_bytes=24 << 20):
    """Apply the fused highway stack.

    x:     (B, D)
    w_cat: (L, D, 2D)   per-layer fused weights (columns [:D]=nonlinear, [D:]=gate)
    b_cat: (L, 1, 2D)   per-layer fused biases (f32)
    """
    B, D = x.shape
    L = w_cat.shape[0]
    assert w_cat.shape == (L, D, 2 * D)
    assert b_cat.shape == (L, 1, 2 * D)

    # ---- lane padding: put the gate half on a 128-lane boundary -------------
    Dp = _round_up(D, 128)
    if Dp != D:
        xp = jnp.zeros((B, Dp), x.dtype).at[:, :D].set(x)
        wp = jnp.zeros((L, Dp, 2 * Dp), w_cat.dtype)
        wp = wp.at[:, :D, :D].set(w_cat[:, :, :D])
        wp = wp.at[:, :D, Dp:Dp + D].set(w_cat[:, :, D:])
        bp = jnp.zeros((L, 1, 2 * Dp), jnp.float32)
        bp = bp.at[:, :, :D].set(b_cat[:, :, :D])
        bp = bp.at[:, :, Dp:Dp + D].set(b_cat[:, :, D:])
    else:
        xp, wp, bp = x, w_cat, b_cat.astype(jnp.float32)

    x_bytes = xp.dtype.itemsize
    w_bytes = wp.dtype.itemsize

    # ---- batch tiling --------------------------------------------------------
    tile_b = min(_round_up(tile_b_max, 8), _round_up(B, 8))
    # Shrink until the activation working set (2x in + 2x out + f32 scratch)
    # fits the per-generation VMEM budget (tightest on v7x: 64 MiB physical).
    while tile_b > 8 and tile_b * Dp * (4 * x_bytes + 4) > act_vmem_budget_bytes:
        tile_b = max(8, _round_up(tile_b // 2, 8))
    # Prefer >= 2 batch tiles so the 'parallel' axis shards over v7x's 2 TCs.
    if _round_up(B, tile_b) // tile_b < 2 and tile_b >= 16:
        tile_b = _round_up(tile_b // 2, 8)
    B_pad = _round_up(B, tile_b)
    nb = B_pad // tile_b
    if B_pad != B:
        xp = jnp.zeros((B_pad, Dp), xp.dtype).at[:B].set(xp)

    # ---- weight residency decision ------------------------------------------
    per_layer_w = Dp * 2 * Dp * w_bytes
    stack_w = L * per_layer_w
    resident = stack_w <= resident_budget_bytes
    # TODO(synk): for very large D (per-layer weight > ~1/2 VMEM) add a grid
    # axis over the 2*Dp output columns with f32 accumulation instead of
    # streaming whole-layer weight blocks.

    if resident:
        # Full stack, constant block index -> DMA'd once, stays VMEM-resident.
        w_spec = pl.BlockSpec((L, Dp, 2 * Dp), lambda b, l: (0, 0, 0))
        b_spec = pl.BlockSpec((L, 1, 2 * Dp), lambda b, l: (0, 0, 0))
    else:
        # Stream one layer at a time; deeper buffering hides the weight DMA.
        w_spec = pl.BlockSpec((1, Dp, 2 * Dp), lambda b, l: (l, 0, 0),
                              pipeline_mode=pl.Buffered(3))
        b_spec = pl.BlockSpec((1, 1, 2 * Dp), lambda b, l: (l, 0, 0))

    # ---- VMEM limit sized to the actual working set --------------------------
    act_ws = tile_b * Dp * (4 * x_bytes + 4)
    if resident:
        w_ws = 2 * stack_w + 2 * L * 2 * Dp * 4
    else:
        w_ws = 3 * per_layer_w + 3 * 2 * Dp * 4
    vmem_limit = int(min(max((act_ws + w_ws) * 3 // 2 + (4 << 20), 32 << 20),
                         96 << 20))

    out_pad = pl.pallas_call(
        partial(_highway_kernel, resident=resident),
        out_shape=jax.ShapeDtypeStruct((B_pad, Dp), x.dtype),
        grid_spec=pltpu.PrefetchScalarGridSpec(
            num_scalar_prefetch=0,
            grid=(nb, L),
            in_specs=[
                # activations: same block across the layer axis (fetched once/tile)
                pl.BlockSpec((tile_b, Dp), lambda b, l: (b, 0)),
                w_spec,
                b_spec,
            ],
            out_specs=pl.BlockSpec((tile_b, Dp), lambda b, l: (b, 0)),
            scratch_shapes=[pltpu.VMEM((tile_b, Dp), jnp.float32)],
        ),
        compiler_params=pltpu.CompilerParams(
            dimension_semantics=("parallel", "arbitrary"),
            vmem_limit_bytes=vmem_limit),
    )(xp, wp, bp)

    return out_pad[:B, :D]


def init_highway_params(key, input_dim, num_layers, dtype=jnp.float32):
    """Mimics torch.nn.Linear(D, 2D) init per layer, with bias[D:] = 1.

    Returns fused, stacked params:
      w_cat: (L, D, 2D) == stack of torch weight.T  (x @ w_cat[l] == layer(x) - bias)
      b_cat: (L, 1, 2D) f32
    """
    bound = 1.0 / (input_dim ** 0.5)
    w_list, b_list = [], []
    for _ in range(num_layers):
        key, kw, kb = jax.random.split(key, 3)
        w_full = jax.random.uniform(kw, (2 * input_dim, input_dim),
                                    minval=-bound, maxval=bound, dtype=jnp.float32)
        b_full = jax.random.uniform(kb, (2 * input_dim,),
                                    minval=-bound, maxval=bound, dtype=jnp.float32)
        b_full = b_full.at[input_dim:].set(1.0)   # layer.bias[input_dim:].fill_(1)
        w_list.append(w_full.T)                   # (D, 2D)
        b_list.append(b_full.reshape(1, -1))      # (1, 2D)
    w_cat = jnp.stack(w_list).astype(dtype)       # bf16 weights also supported
    b_cat = jnp.stack(b_list).astype(jnp.float32)
    return w_cat, b_cat


def highway_reference(x, w_cat, b_cat):
    """Pure-JAX reference of the PyTorch forward (f32 accumulation throughout)."""
    D = x.shape[-1]
    cur = x.astype(jnp.float32)
    for l in range(w_cat.shape[0]):
        proj = cur @ w_cat[l].astype(jnp.float32) + b_cat[l]
        nonlinear = jnp.maximum(proj[:, :D], 0.0)
        gate = jax.nn.sigmoid(proj[:, D:])
        cur = gate * cur + (1.0 - gate) * nonlinear
    return cur.astype(x.dtype)


if __name__ == "__main__":
    batch_size = 8
    input_dim = 32
    num_layers = 2

    key = jax.random.PRNGKey(0)
    key, kx = jax.random.split(key)
    x = jax.random.normal(kx, (batch_size, input_dim), dtype=jnp.float32)

    w_cat, b_cat = init_highway_params(key, input_dim, num_layers)

    out = highway_forward(x, w_cat, b_cat)
    out = jax.block_until_ready(out)

    ref = highway_reference(x, w_cat, b_cat)
    assert out.shape == (batch_size, input_dim)
    assert jnp.allclose(out, ref, atol=1e-5, rtol=1e-5), "mismatch vs reference"

    print("KERNEL_OK")
</pallas_src>

<mosaic_0001>
module attributes {stable_mosaic.version = 11 : i64} {
  func.func @_highway_kernel(%arg0: i32, %arg1: i32, %arg2: memref<8x128xf32, #tpu.memory_space<vmem>>, %arg3: memref<2x128x256xf32, #tpu.memory_space<vmem>>, %arg4: memref<2x1x256xf32, #tpu.memory_space<vmem>>, %arg5: memref<8x128xf32, #tpu.memory_space<vmem>>, %arg6: memref<8x128xf32, #tpu.memory_space<vmem>>) attributes {dimension_semantics = [#tpu.dimension_semantics<parallel>, #tpu.dimension_semantics<arbitrary>], iteration_bounds = array<i64: 1, 2>, scalar_prefetch = 0 : i64, scratch_operands = 1 : i64, tpu.core_type = #tpu.core_type<tc>, window_params = [{transform_indices = @transform_0, window_bounds = array<i64: 8, 128>}, {pipeline_mode = #tpu.pipeline_mode<synchronous>, transform_indices = @transform_1, window_bounds = array<i64: 2, 128, 256>}, {pipeline_mode = #tpu.pipeline_mode<synchronous>, transform_indices = @transform_2, window_bounds = array<i64: 2, 1, 256>}, {transform_indices = @transform_3, window_bounds = array<i64: 8, 128>}]} {
    %c0_i32 = arith.constant 0 : i32
    %0 = arith.cmpi eq, %arg1, %c0_i32 : i32
    %1 = arith.extui %0 : i1 to i32
    %c0_i32_0 = arith.constant 0 : i32
    %2 = arith.cmpi ne, %1, %c0_i32_0 : i32
    scf.if %2 {
      %c0_13 = arith.constant 0 : index
      %c0_14 = arith.constant 0 : index
      %31 = vector.load %arg2[%c0_13, %c0_14] : memref<8x128xf32, #tpu.memory_space<vmem>>, vector<8x128xf32>
      %c0_15 = arith.constant 0 : index
      %c0_16 = arith.constant 0 : index
      %32 = vector.load %arg6[%c0_15, %c0_16] : memref<8x128xf32, #tpu.memory_space<vmem>>, vector<8x128xf32>
      tpu.vector_store %arg6[%c0_15, %c0_16], %31 {strides = array<i32>} : memref<8x128xf32, #tpu.memory_space<vmem>>, vector<8x128xf32>,
    } else {
    }
    %c0 = arith.constant 0 : index
    %c0_1 = arith.constant 0 : index
    %3 = vector.load %arg6[%c0, %c0_1] : memref<8x128xf32, #tpu.memory_space<vmem>>, vector<8x128xf32>
    %4 = arith.index_cast %arg1 : i32 to index
    %c0_2 = arith.constant 0 : index
    %c0_3 = arith.constant 0 : index
    %5 = vector.load %arg3[%4, %c0_2, %c0_3] : memref<2x128x256xf32, #tpu.memory_space<vmem>>, vector<1x128x256xf32>
    %6 = vector.shape_cast %5 : vector<1x128x256xf32> to vector<128x256xf32>
    %7 = arith.index_cast %arg1 : i32 to index
    %c0_4 = arith.constant 0 : index
    %c0_5 = arith.constant 0 : index
    %8 = vector.load %arg4[%7, %c0_4, %c0_5] : memref<2x1x256xf32, #tpu.memory_space<vmem>>, vector<1x1x256xf32>
    %9 = vector.shape_cast %8 : vector<1x1x256xf32> to vector<1x256xf32>
    %cst = arith.constant dense<0.000000e+00> : vector<8x256xf32>
    %10 = tpu.matmul %3, %6, %cst {dimension_numbers = #tpu.dot_dimension_numbers<[1], [0], [0], [1], [0, 0, 1, 1], [], []>} : vector<8x128xf32>, vector<128x256xf32>, vector<8x256xf32> -> vector<8x256xf32>
    %11 = vector.broadcast %9 : vector<1x256xf32> to vector<8x256xf32>
    %12 = arith.addf %10, %11 : vector<8x256xf32>
    %13 = vector.extract_strided_slice %12 {offsets = [0, 0], sizes = [8, 128], strides = [1, 1]} : vector<8x256xf32> to vector<8x128xf32>
    %cst_6 = arith.constant 0.000000e+00 : f32
    %14 = vector.broadcast %cst_6 : f32 to vector<8x128xf32>
    %15 = arith.maximumf %13, %14 : vector<8x128xf32>
    %16 = vector.extract_strided_slice %12 {offsets = [0, 128], sizes = [8, 128], strides = [1, 1]} : vector<8x256xf32> to vector<8x128xf32>
    %cst_7 = arith.constant 5.000000e-01 : f32
    %17 = vector.broadcast %cst_7 : f32 to vector<8x128xf32>
    %18 = arith.mulf %17, %16 : vector<8x128xf32>
    %19 = math.tanh %18 : vector<8x128xf32>
    %cst_8 = arith.constant 1.000000e+00 : f32
    %20 = vector.broadcast %cst_8 : f32 to vector<8x128xf32>
    %21 = arith.addf %19, %20 : vector<8x128xf32>
    %cst_9 = arith.constant 5.000000e-01 : f32
    %22 = vector.broadcast %cst_9 : f32 to vector<8x128xf32>
    %23 = arith.mulf %22, %21 : vector<8x128xf32>
    %24 = arith.subf %3, %15 : vector<8x128xf32>
    %25 = arith.mulf %23, %24 : vector<8x128xf32>
    %26 = arith.addf %15, %25 : vector<8x128xf32>
    %c0_10 = arith.constant 0 : index
    %c0_11 = arith.constant 0 : index
    %27 = vector.load %arg6[%c0_10, %c0_11] : memref<8x128xf32, #tpu.memory_space<vmem>>, vector<8x128xf32>
    tpu.vector_store %arg6[%c0_10, %c0_11], %26 {strides = array<i32>} : memref<8x128xf32, #tpu.memory_space<vmem>>, vector<8x128xf32>,
    %c1_i32 = arith.constant 1 : i32
    %28 = arith.cmpi eq, %arg1, %c1_i32 : i32
    %29 = arith.extui %28 : i1 to i32
    %c0_i32_12 = arith.constant 0 : i32
    %30 = arith.cmpi ne, %29, %c0_i32_12 : i32
    scf.if %30 {
      %c0_13 = arith.constant 0 : index
      %c0_14 = arith.constant 0 : index
      %31 = vector.load %arg5[%c0_13, %c0_14] : memref<8x128xf32, #tpu.memory_space<vmem>>, vector<8x128xf32>
      tpu.vector_store %arg5[%c0_13, %c0_14], %26 {strides = array<i32>} : memref<8x128xf32, #tpu.memory_space<vmem>>, vector<8x128xf32>,
    } else {
    }
    return
  }
  func.func @transform_0(%arg0: i32, %arg1: i32) -> (i32, i32) {
    %c0_i32 = arith.constant 0 : i32
    %c0_i32_0 = arith.constant 0 : i32
    return %arg0, %c0_i32 : i32, i32
  }
  func.func @transform_1(%arg0: i32, %arg1: i32) -> (i32, i32, i32) {
    %c0_i32 = arith.constant 0 : i32
    %c0_i32_0 = arith.constant 0 : i32
    %c0_i32_1 = arith.constant 0 : i32
    %c0_i32_2 = arith.constant 0 : i32
    return %c0_i32, %c0_i32_0, %c0_i32_1 : i32, i32, i32
  }
  func.func @transform_2(%arg0: i32, %arg1: i32) -> (i32, i32, i32) {
    %c0_i32 = arith.constant 0 : i32
    %c0_i32_0 = arith.constant 0 : i32
    %c0_i32_1 = arith.constant 0 : i32
    %c0_i32_2 = arith.constant 0 : i32
    return %c0_i32, %c0_i32_0, %c0_i32_1 : i32, i32, i32
  }
  func.func @transform_3(%arg0: i32, %arg1: i32) -> (i32, i32) {
    %c0_i32 = arith.constant 0 : i32
    %c0_i32_0 = arith.constant 0 : i32
    return %arg0, %c0_i32 : i32, i32
  }
}

</mosaic_0001>

<bundles_post_ra>
// kernel: tpu_custom_call.1
= control target key start
LH: loop header
LB: loop body
LE: loop exit
PB: predicated region body
PF: predicated region fallthrough
CT: control target
= control target key end

     0   :  { %8 = vsyncpa [#allocation4], 0  ;;  %s831_s0 = inlined_call_operand.hbm [shape: f32[8,128], index: 0, kind: input, shape index: {}]   ;;  %s832_s1 = inlined_call_operand.hbm [shape: f32[2,128,256], index: 1, kind: input, shape index: {}]   ;;  %s833_s2 = inlined_call_operand.vmem [shape: f32[2,1,256], index: 2, kind: input, shape index: {}]   ;;  %s834_s3 = inlined_call_operand.hbm [shape: f32[8,128], index: 3, kind: output, shape index: {}]  }
   0x1   :  { %9 = vsyncpa [#allocation7], 0 }
   0x2   :  { %10 = vsyncpa [#allocation5], 0  ;;  %s655_s12 = smov 0   ;;  %s657_s13 = smov 0  }
   0x3   :  { %s659_s14 = smov 0  }
   0x4 LB: > { %s405_s15 = sadd.s32 4294967295, %s627_s14   ;;  %s25_s16 = sadd.s32 1, %s623_s13  ;;  %s627_s14 = sphi %s659_s14, %s16_s14   ;;  %s623_s13 = sphi %s657_s13, %s845_s13   ;;  %s619_s12 = sphi %s655_s12, %s844_s12  }
   0x5   : > { %p26_p0 = scmp.ge.s32.totalorder %s25_s16, 2  ;;  %p406_p1 = scmp.ge.s32.totalorder %s627_s14, 1 }
   0x6   : > { %p127_p2 = scmp.lt.s32.totalorder %s627_s14, 3  ;;  %p682_p4 = scmp.eq.s32.totalorder %s405_s15, 0 }
   0x7   : > { %s847_s16 = smov (%p26_p0, %s25_s16), 0  ;;  %s629_s19 = smov [#allocation3]  }
   0x8   : > { %p676_p3 = pnand %p406_p1, %p127_p2  ;;  %s142_s20 = sshll.u32 %s629_s19, 4  ;;  %s143_s20 = int_to_ptr.vmem [resolvable:$true] %s142_s20 }
   0x9   : > { %s839_s18 = scalar_select %p682_p4, 1, 0 }
   0xa   : > { %s838_s17 = scalar_select %p676_p3, 1, 0 }
   0xb   : > { %p466_p5 = pneg %p676_p3  ;;  %s630_s21 = smov [#allocation6]  }
   0xc   : > { %s152_s22 = sshll.u32 %s630_s21, 4  ;;  %s511_s26 = scalar_lea.hbm %s831_s0, 128  ;;  %s694_s22 = int_to_ptr.vmem [resolvable:$true] %s152_s22 }
   0xd   : > { %p690_p6 = pnand %p682_p4, %p466_p5  ;;  %p512_p7 = scmp.ne.s32.totalorder %s831_s0, %s511_s26 }
   0xe   : > { %p518_p11 = scmp.lt.u32.totalorder %s511_s26, %s831_s0 }
   0xf   : > { %p513_p8 = pneg %p690_p6 }
  0x11   : > { %p514_p9 = pnand %p513_p8, %p512_p7 }
  0x13   : > { %p515_p10 = pneg %p514_p9 }
  0x15   : > { %p520_p12 = pnand %p518_p11, %p515_p10 }
  0x17   : > { %523 = shalt.err (!%p520_p12)
}
  0x18   : > { %s524_s4 = scalar_lea.vmem %s143_s20, 128  ;;  %p532_p2 = scmp.lt.s32.totalorder %s143_s20, %s143_s20 }
  0x19   : > { %p525_p13 = scmp.ne.s32.totalorder %s143_s20, %s524_s4  ;;  %p533_p5 = scmp.lt.s32.totalorder %s524_s4, %s524_s4 }
  0x1b   : > { %p527_p0 = pnand %p525_p13, %p513_p8  ;;  %p534_p4 = por %p533_p5, %p532_p2 }
  0x1d   : > { %p528_p1 = pneg %p527_p0 }
  0x1f   : > { %p535_p3 = pnand %p534_p4, %p528_p1 }
  0x21   : > { %538 = shalt.err (!%p535_p3)
}
  0x22   : > { %469 = dma.hbm_to_vmem [thread:$0]  (!%p690_p6), %s831_s0, 128, %s143_s20, [#allocation4]  }
  0x23   : > { %s539_s9 = scalar_lea.hbm %s832_s1, 8192 }
  0x24   : > { %p540_p7 = scmp.ne.s32.totalorder %s832_s1, %s539_s9  ;;  %p546_p3 = scmp.lt.u32.totalorder %s539_s9, %s832_s1 }
  0x26   : > { %p542_p9 = pnand %p540_p7, %p513_p8 }
  0x28   : > { %p543_p4 = pneg %p542_p9 }
  0x2a   : > { %p548_p10 = pnand %p546_p3, %p543_p4 }
  0x2c   : > { %551 = shalt.err (!%p548_p10)
}
  0x2d   : > { %s552_s20 = scalar_lea.vmem %s694_s22, 8192  ;;  %p560_p0 = scmp.lt.s32.totalorder %s694_s22, %s694_s22 }
  0x2e   : > { %p553_p11 = scmp.ne.s32.totalorder %s694_s22, %s552_s20  ;;  %p561_p1 = scmp.lt.s32.totalorder %s552_s20, %s552_s20 }
  0x30   : > { %p555_p12 = pnand %p553_p11, %p513_p8  ;;  %p562_p2 = por %p561_p1, %p560_p0 }
  0x32   : > { %p556_p13 = pneg %p555_p12 }
  0x34   : > { %p563_p5 = pnand %p562_p2, %p556_p13 }
  0x36   : > { %566 = shalt.err (!%p563_p5)
}
  0x37   : > { %s631_s24 = smov 256   ;;  %s632_s25 = smov 16  }
  0x38   : > { %472 = dma.hbm_to_vmem [thread:$0]  (!%p690_p6), %s832_s1, 8192, %s694_s22, [#allocation7], %s631_s24, %s631_s24, %s632_s25  }
  0x39   : > { %p841_p7 = scmp.ne.s32.totalorder %s838_s17, 0 }
  0x3a   : > { %p842_p8 = scmp.ne.s32.totalorder (!%p841_p7), %s839_s18, 0 }
  0x3b   : > { %171 = sbr.rel (%p841_p7) target bundleno = 377 (0x179), region = 32 }
  0x42   : > { %606 = dma.done.wait (%p842_p8), [#allocation4], 128  }
  0x43   : > { %608 = vsyncadd (%p842_p8), [#allocation4], 4294967168 }
  0x44   : > { %610 = dma.done.wait (%p842_p8), [#allocation7], 8192  }
  0x45   : > { %612 = vsyncadd (%p842_p8), [#allocation7], 4294959104  ;;  %p412_p9 = scmp.ne.s32.totalorder %s619_s12, 0 }
  0x46   : > { %v193_v0 = vld [vmem:[#allocation3] sm:$0xff] (!%p412_p9) }
  0x47   : > { %192 = sbr.rel (%p412_p9) target bundleno = 78 (0x4e), region = 44  ;;  %194 = vst [vmem:[#allocation2] sm:$0xff] (!%p412_p9), %v193_v0 }
  0x4e PF: > { %s421_s17 = sshll.u32 %s619_s12, 8  ;;  %v633_v1 = vmov 0.0   ;;  %v195_v50 = vld [vmem:[#allocation2] sm:$0xff]  ;;  %v235_v51 = vlaneseq  ;;  %s415_s18 = sshll.u32 %s619_s12, 1 }
  0x4f   : > { %309 = vmatprep.mubr.f32.mxu0 %v633_v1  ;;  %s755_s22 = scalar_lea.vmem [#allocation6], %s421_s17  ;;  %s232_s29 = scalar_lea.vmem %s833_s2, %s415_s18 }
  0x50   : > { %v200_v2 = vld [vmem:[%s755_s22 + $0x8] sm:$0xff]  ;;  %v202_v3 = vld [vmem:[%s755_s22 + $0x18] sm:$0xff]  ;;  %v199_v4 = vld [vmem:[%s755_s22] sm:$0xff]  ;;  %v236_v52 = vshrl.u32 %v235_v51, 7  ;;  %p416_p6 = scmp.ne.s32.totalorder %s619_s12, 1 }
  0x51   : > { %v422_v5 = vpack.c.bf16 %v202_v3, %v200_v2  ;;  %v201_v6 = vld [vmem:[%s755_s22 + $0x10] sm:$0xff]  ;;  %v204_v7 = vld [vmem:[%s755_s22 + $0x28] sm:$0xff]  ;;  %v206_v8 = vld [vmem:[%s755_s22 + $0x38] sm:$0xff] }
  0x52   : > { %v424_v9 = vpack.c.bf16 %v201_v6, %v199_v4  ;;  %v426_v10 = vpack.c.bf16 %v206_v8, %v204_v7  ;;  %v203_v11 = vld [vmem:[%s755_s22 + $0x20] sm:$0xff]  ;;  %v205_v12 = vld [vmem:[%s755_s22 + $0x30] sm:$0xff]  ;;  %v208_v13 = vld [vmem:[%s755_s22 + $0x48] sm:$0xff]  ;;  %v241_v53 = vsub.s32 1, %v236_v52  ;;  %v237_v59 = vsub.s32 0, %v236_v52 }
  0x53   : > { %423 = vmatprep.subr.bf16.mxu0 %v422_v5  ;;  %v210_v14 = vld [vmem:[%s755_s22 + $0x58] sm:$0xff]  ;;  %v428_v15 = vpack.c.bf16 %v205_v12, %v203_v11  ;;  %v207_v17 = vld [vmem:[%s755_s22 + $0x40] sm:$0xff]  ;;  %v209_v18 = vld [vmem:[%s755_s22 + $0x50] sm:$0xff] }
  0x54   : > { %425 = vmatpush1.bf16.msra.mxu0 %v424_v9  ;;  %v430_v16 = vpack.c.bf16 %v210_v14, %v208_v13  ;;  %v212_v19 = vld [vmem:[%s755_s22 + $0x68] sm:$0xff]  ;;  %v214_v20 = vld [vmem:[%s755_s22 + $0x78] sm:$0xff]  ;;  %v432_v21 = vpack.c.bf16 %v209_v18, %v207_v17  ;;  %v211_v23 = vld [vmem:[%s755_s22 + $0x60] sm:$0xff] }
  0x55   : > { %427 = vmatprep.subr.bf16.mxu0 %v426_v10  ;;  %v434_v22 = vpack.c.bf16 %v214_v20, %v212_v19  ;;  %v213_v24 = vld [vmem:[%s755_s22 + $0x70] sm:$0xff]  ;;  %v216_v25 = vld [vmem:[%s755_s22 + $0x88] sm:$0xff]  ;;  %v218_v26 = vld [vmem:[%s755_s22 + $0x98] sm:$0xff] }
  0x56   : > { %v436_v27 = vpack.c.bf16 %v213_v24, %v211_v23  ;;  %v438_v28 = vpack.c.bf16 %v218_v26, %v216_v25  ;;  %v215_v29 = vld [vmem:[%s755_s22 + $0x80] sm:$0xff]  ;;  %v217_v30 = vld [vmem:[%s755_s22 + $0x90] sm:$0xff]  ;;  %v220_v31 = vld [vmem:[%s755_s22 + $0xa8] sm:$0xff] }
  0x57   : > { %v222_v32 = vld [vmem:[%s755_s22 + $0xb8] sm:$0xff]  ;;  %v440_v33 = vpack.c.bf16 %v217_v30, %v215_v29  ;;  %v219_v35 = vld [vmem:[%s755_s22 + $0xa0] sm:$0xff]  ;;  %v221_v36 = vld [vmem:[%s755_s22 + $0xb0] sm:$0xff] }
  0x58   : > { %429 = vmatpush1.bf16.msra.mxu0 %v428_v15  ;;  %v442_v34 = vpack.c.bf16 %v222_v32, %v220_v31  ;;  %v224_v37 = vld [vmem:[%s755_s22 + $0xc8] sm:$0xff]  ;;  %v226_v38 = vld [vmem:[%s755_s22 + $0xd8] sm:$0xff]  ;;  %v444_v39 = vpack.c.bf16 %v221_v36, %v219_v35  ;;  %v223_v41 = vld [vmem:[%s755_s22 + $0xc0] sm:$0xff] }
  0x59   : > { %431 = vmatprep.subr.bf16.mxu0 %v430_v16  ;;  %v446_v40 = vpack.c.bf16 %v226_v38, %v224_v37  ;;  %v225_v42 = vld [vmem:[%s755_s22 + $0xd0] sm:$0xff]  ;;  %v228_v43 = vld [vmem:[%s755_s22 + $0xe8] sm:$0xff]  ;;  %v230_v44 = vld [vmem:[%s755_s22 + $0xf8] sm:$0xff] }
  0x5a   : > { %v448_v45 = vpack.c.bf16 %v225_v42, %v223_v41  ;;  %v450_v46 = vpack.c.bf16 %v230_v44, %v228_v43  ;;  %v227_v47 = vld [vmem:[%s755_s22 + $0xe0] sm:$0xff]  ;;  %v229_v48 = vld [vmem:[%s755_s22 + $0xf0] sm:$0xff] }
  0x5b   : > { %v452_v49 = vpack.c.bf16 %v229_v48, %v227_v47  ;;  %v233_v54 = vld [vmem:[%s232_s29] sm:$0x3] }
  0x5c   : > { %433 = vmatpush1.bf16.msra.mxu0 %v432_v21  ;;  %v242_v55 = vrot.slane %v233_v54, %v241_v53  ;;  %v238_v61 = vrot.slane %v233_v54, %v237_v59 }
  0x5d   : > { %435 = vmatprep.subr.bf16.mxu0 %v434_v22 }
  0x60   : > { %437 = vmatpush1.bf16.msra.mxu0 %v436_v27 }
  0x61   : > { %439 = vmatprep.subr.bf16.mxu0 %v438_v28 }
  0x64   : > { %441 = vmatpush1.bf16.msra.mxu0 %v440_v33 }
  0x65   : > { %443 = vmatprep.subr.bf16.mxu0 %v442_v34 }
  0x68   : > { %445 = vmatpush1.bf16.msra.mxu0 %v444_v39 }
  0x69   : > { %447 = vmatprep.subr.bf16.mxu0 %v446_v40 }
  0x6c   : > { %449 = vmatpush1.bf16.msra.mxu0 %v448_v45 }
  0x6d   : > { %451 = vmatprep.subr.bf16.mxu0 %v450_v46 }
  0x70   : > { %453 = vmatpush1.bf16.msra.mxu0 %v452_v49 }
  0x73   : > { %310 = vmatmul.mubr.f32.vlgmr.msra.gmra.mrb[0].mxu0 %v195_v50 }
 0x146   : > { %v311_v56 = vpop.f32.mrb[0].mxu0 }
 0x147   : > { %v313_v57 = vpop.f32.mrb[1].mxu0  ;;  %v312_v62 = vadd.f32 %v311_v56, %v238_v61 }
 0x148   : > { %v314_v58 = vadd.f32 %v313_v57, %v242_v55 }
 0x149   : > { %v316_v63 = vmax.f32 %v312_v62, 0.0 }
 0x14a   : > { %v317_v60 = vmul.f32 0.5, %v314_v58 }
 0x14b   : > { %v321_v2 = vsub.f32 %v195_v50, %v316_v63 }
 0x14c   : > { %509 = vtanh.f32 %v317_v60 }
 0x156   : > { %v510_v0 = vpop.eup %509 }
 0x157   : > { %v319_v1 = vadd.f32 1.0, %v510_v0 }
 0x159   : > { %v320_v3 = vmul.f32 0.5, %v319_v1  ;;  %328 = sbr.rel (%p416_p6) target bundleno = 352 (0x160), region = 48 }
 0x15b   : > { %v322_v4 = vmul.f32 %v321_v2, %v320_v3 }
 0x15d   : > { %v323_v5 = vadd.f32 %v322_v4, %v316_v63 }
 0x15f   : > { %324 = vst [vmem:[#allocation2] sm:$0xff] %v323_v5  ;;  %329 = vst [vmem:[#allocation8] sm:$0xff] (!%p416_p6), %v323_v5 }
 0x160 PF: > { %p796_p4 = scmp.eq.s32.totalorder %s405_s15, 1  ;;  %s634_s4 = smov [#allocation8]  }
 0x161   : > { %s339_s5 = sshll.u32 %s634_s4, 4  ;;  %s340_s5 = int_to_ptr.vmem [resolvable:$true] %s339_s5 }
 0x162   : > { %s567_s6 = scalar_lea.vmem %s340_s5, 128  ;;  %p574_p12 = scmp.lt.s32.totalorder %s340_s5, %s340_s5 }
 0x163   : > { %p568_p3 = scmp.ne.s32.totalorder %s340_s5, %s567_s6  ;;  %p575_p13 = scmp.lt.s32.totalorder %s567_s6, %s567_s6 }
 0x165   : > { %p569_p10 = pnand %p568_p3, %p796_p4  ;;  %p576_p0 = por %p575_p13, %p574_p12 }
 0x167   : > { %p570_p11 = pneg %p569_p10 }
 0x169   : > { %p577_p1 = pnand %p576_p0, %p570_p11 }
 0x16b   : > { %580 = shalt.err (!%p577_p1)
}
 0x16c   : > { %s581_s15 = scalar_lea.hbm %s834_s3, 128 }
 0x16d   : > { %p582_p2 = scmp.ne.s32.totalorder %s834_s3, %s581_s15  ;;  %p587_p8 = scmp.lt.u32.totalorder %s581_s15, %s834_s3 }
 0x16f   : > { %p583_p5 = pnand %p582_p2, %p796_p4 }
 0x171   : > { %p584_p7 = pneg %p583_p5 }
 0x173   : > { %p589_p9 = pnand %p587_p8, %p584_p7 }
 0x175   : > { %592 = shalt.err (!%p589_p9)
}
 0x176   : > { %463 = dma.vmem_to_hbm [thread:$0]  (%p796_p4), %s340_s5, 128, %s834_s3, [#allocation5]  }
 0x177   : > { %614 = dma.done.wait (%p796_p4), [#allocation5], 128  }
 0x178   : > { %616 = vsyncadd (%p796_p4), [#allocation5], 4294967168 }
 0x179 PF: > { %s16_s14 = sadd.s32 1, %s627_s14   ;;  %s844_s12 = smov %s623_s13 }
 0x17a   : > { %p13_p6 = scmp.ge.s32.totalorder %s16_s14, 4   ;;  %s845_s13 = smov %s847_s16 }
 0x17c   :  { %15 = sbr.rel (!%p13_p6) target bundleno = 4 (0x4), region = 77 }
 0x183   :  { %352 = vsyncpa [#allocation4], 1 }
 0x184   :  { %354 = vsyncpa [#allocation4 + $0x1], 1 }
 0x185   :  { %355 = vsyncpa [#allocation7], 1 }
 0x186   :  { %356 = vsyncpa [#allocation5], 1 }
 0x187   :  { %358 = vsyncpa [#allocation5 + $0x1], 1 }

</bundles_post_ra>
